<compile_context>
chip_gen: v7x
topology: tpu7x:2x2x1
jax: 0.10.0
libtpu: 0.0.40
codegen_flags: <defaults>
</compile_context>

<pallas_src>
import jax
import jax.numpy as jnp
import numpy as np
from jax.experimental import pallas as pl
from jax.experimental.pallas import tpu as pltpu

# Row layout of the packed per-layer small-vector table `vec` (n_layers, 21, size).
LN1_G, LN1_B, LN2_G, LN2_B = 0, 1, 2, 3
TM_MIX_K, TM_MIX_V, TM_MIX_R, TM_BONUS = 4, 5, 6, 7
TM_B_K, TM_B_V, TM_B_R, TM_B_OUT = 8, 9, 10, 11
TM_LAST_X, TM_LAST_NUM, TM_LAST_DEN = 12, 13, 14
CM_MIX_K, CM_MIX_R = 15, 16
CM_B_K, CM_B_R, CM_B_V = 17, 18, 19
CM_LAST_X = 20
VEC_ROWS = 21

# Plane layout of the packed per-layer weight tensor (n_layers, 7, size, size).
W_TM_K, W_TM_V, W_TM_R, W_TM_OUT = 0, 1, 2, 3
W_CM_K, W_CM_R, W_CM_V = 4, 5, 6
W_PLANES = 7

_EPS = 1e-5


def _layer_norm(x, g, b):
    m = jnp.mean(x, axis=-1, keepdims=True)
    v = jnp.mean((x - m) ** 2, axis=-1, keepdims=True)
    return (x - m) * jax.lax.rsqrt(v + _EPS) * g + b


def _dot_bf16(lhs_f32, w_bf16):
    # bf16 MXU feed, f32 accumulation.
    return jnp.dot(lhs_f32.astype(jnp.bfloat16), w_bf16,
                   preferred_element_type=jnp.float32)


def _vmem_budget_bytes(headroom=16 << 20):
    """Physical VMEM minus headroom (128 MiB on v5e/v6e, 64 MiB on v7x)."""
    try:
        cap = int(pltpu.get_tpu_info().vmem_capacity_bytes)
    except Exception:  # pragma: no cover - defensive fallback
        cap = 128 << 20
    return max(cap - headroom, 24 << 20)


# ----------------------------------------------------------------------------
# Kernel 1: layer stack.  grid=(n_layers,), per-layer bf16 weight streaming,
# x carried in VMEM scratch across grid steps.
# ----------------------------------------------------------------------------
def rwkv_layers_kernel(x0_ref,       # (1, size) f32            embedded token (resident)
                       ln_edge_ref,  # (4, size) f32            ln0 g/b, ln_final g/b (resident)
                       vec_ref,      # (1, 21, size) f32        this layer's small vectors
                       w_ref,        # (1, 7, size, size) bf16  all 7 weight matrices
                       o_ref,        # (1, size) f32            final LayerNorm'd x (resident)
                       x_sc):        # (1, size) f32 scratch    carried hidden state
    i = pl.program_id(0)
    n_layers = pl.num_programs(0)

    def vrow(r):                      # static row slice -> (1, size)
        return vec_ref[0, r:r + 1, :]

    @pl.when(i == 0)
    def _():
        x_sc[...] = _layer_norm(x0_ref[...], ln_edge_ref[0:1, :], ln_edge_ref[1:2, :])

    x = x_sc[...]

    # ----------------------------- TimeMixing -----------------------------
    x_ = _layer_norm(x, vrow(LN1_G), vrow(LN1_B))
    last_x, last_num, last_den = vrow(TM_LAST_X), vrow(TM_LAST_NUM), vrow(TM_LAST_DEN)
    mk, mv, mr = vrow(TM_MIX_K), vrow(TM_MIX_V), vrow(TM_MIX_R)

    k = _dot_bf16(x_ * mk + last_x * (1.0 - mk), w_ref[0, W_TM_K]) + vrow(TM_B_K)
    v = _dot_bf16(x_ * mv + last_x * (1.0 - mv), w_ref[0, W_TM_V]) + vrow(TM_B_V)
    r = _dot_bf16(x_ * mr + last_x * (1.0 - mr), w_ref[0, W_TM_R]) + vrow(TM_B_R)

    ebk = jnp.exp(vrow(TM_BONUS) + k)
    # EUP approximate reciprocal + VALU multiply instead of a divide.
    wkv = (last_num + ebk * v) * pl.reciprocal(last_den + ebk, approx=True)
    rwkv = jax.nn.sigmoid(r) * wkv
    x = x + _dot_bf16(rwkv, w_ref[0, W_TM_OUT]) + vrow(TM_B_OUT)
    # TODO(synk): recurrent-state side effects (last_x / num / den via `decay`)
    # are not part of the module's returned forward output and are omitted here.

    # ---------------------------- ChannelMixing ----------------------------
    x_ = _layer_norm(x, vrow(LN2_G), vrow(LN2_B))
    c_last = vrow(CM_LAST_X)
    cmk, cmr = vrow(CM_MIX_K), vrow(CM_MIX_R)

    k = _dot_bf16(x_ * cmk + c_last * (1.0 - cmk), w_ref[0, W_CM_K]) + vrow(CM_B_K)
    r = _dot_bf16(x_ * cmr + c_last * (1.0 - cmr), w_ref[0, W_CM_R]) + vrow(CM_B_R)
    vk = _dot_bf16(jnp.maximum(k, 0.0) ** 2, w_ref[0, W_CM_V]) + vrow(CM_B_V)
    x = x + jax.nn.sigmoid(r) * vk

    x_sc[...] = x

    # Resident output block: written exactly once, on the last grid step.
    @pl.when(i == n_layers - 1)
    def _():
        o_ref[...] = _layer_norm(x, ln_edge_ref[2:3, :], ln_edge_ref[3:4, :])


# ----------------------------------------------------------------------------
# Kernel 2: vocab-tiled head GEMV, lane-dense (1, n_embed) logits output,
# parallel vocab grid (both TensorCores on v7x).  Softmax is done in JAX.
# ----------------------------------------------------------------------------
def rwkv_head_kernel(x_ref,     # (1, size) f32            (resident)
                     w_ref,     # (1, size, tile_v) bf16   contiguous head_W tile
                     b_ref,     # (1, tile_v) f32          head bias tile
                     o_ref):    # (1, tile_v) f32          logits tile (lane-dense slab)
    o_ref[...] = _dot_bf16(x_ref[...], w_ref[0]) + b_ref[...]


# ----------------------------------------------------------------------------
# Parameter packing (what you would do once from a PyTorch state dict).
# ----------------------------------------------------------------------------
def pack_params(p, n_layers, size):
    f32, bf16 = jnp.float32, jnp.bfloat16
    ln_g, ln_b = p["ln_g"], p["ln_b"]
    ln_edge = jnp.stack([ln_g[0], ln_b[0], ln_g[-1], ln_b[-1]]).astype(f32)

    rows = []
    for i in range(n_layers):
        rows.append(jnp.stack([
            ln_g[2 * i + 1], ln_b[2 * i + 1], ln_g[2 * i + 2], ln_b[2 * i + 2],
            p["tm_mix"][3 * i + 0], p["tm_mix"][3 * i + 1], p["tm_mix"][3 * i + 2],
            p["tm_bonus"][i],
            p["tm_b"][4 * i + 0], p["tm_b"][4 * i + 1], p["tm_b"][4 * i + 2], p["tm_b"][4 * i + 3],
            p["tm_state"][3 * i + 0], p["tm_state"][3 * i + 1], p["tm_state"][3 * i + 2],
            p["cm_mix"][2 * i + 0], p["cm_mix"][2 * i + 1],
            p["cm_b"][3 * i + 0], p["cm_b"][3 * i + 1], p["cm_b"][3 * i + 2],
            p["cm_state"][i],
        ]))
    vec = jnp.stack(rows).astype(f32)                                   # (n_layers, 21, size)

    # Single coalesced per-layer weight tensor: one DMA descriptor per layer.
    layer_w = jnp.concatenate(
        [p["tm_W"].reshape(n_layers, 4, size, size),
         p["cm_W"].reshape(n_layers, 3, size, size)], axis=1).astype(bf16)  # (n_layers, 7, S, S)

    head_w = p["head_W"].astype(bf16)       # (size, n_embed), re-tiled in the wrapper
    head_b = p["head_b"].astype(f32)        # (1, n_embed)
    return ln_edge, vec, layer_w, head_w, head_b


# ----------------------------------------------------------------------------
# Wrapper
# ----------------------------------------------------------------------------
def rwkv_forward(token, p, n_layers, size, n_embed, tile_v=512):
    ln_edge, vec, layer_w, head_w, head_b = pack_params(p, n_layers, size)
    x0 = p["emb"][token].reshape(1, size).astype(jnp.float32)          # embedding gather in JAX

    vmem_budget = _vmem_budget_bytes()

    # ---------------- layer stack ----------------
    layer_block_bytes = W_PLANES * size * size * 2 + VEC_ROWS * size * 4
    vmem_layers = int(min(vmem_budget,
                          max(16 << 20, 2 * layer_block_bytes + (8 << 20))))

    x_final = pl.pallas_call(
        rwkv_layers_kernel,
        out_shape=jax.ShapeDtypeStruct((1, size), jnp.float32),
        grid_spec=pltpu.PrefetchScalarGridSpec(
            num_scalar_prefetch=0,
            grid=(n_layers,),
            in_specs=[
                pl.BlockSpec((1, size), lambda i: (0, 0)),                        # x0 (resident)
                pl.BlockSpec((4, size), lambda i: (0, 0)),                        # ln0 / ln_final
                pl.BlockSpec((1, VEC_ROWS, size), lambda i: (i, 0, 0)),           # per-layer vectors
                pl.BlockSpec((1, W_PLANES, size, size), lambda i: (i, 0, 0, 0)),  # 7 weights (bf16)
            ],
            out_specs=pl.BlockSpec((1, size), lambda i: (0, 0)),
            scratch_shapes=[pltpu.VMEM((1, size), jnp.float32)],
        ),
        compiler_params=pltpu.CompilerParams(
            dimension_semantics=("arbitrary",),          # sequential x carry across layers
            vmem_limit_bytes=vmem_layers),
    )(x0, ln_edge, vec, layer_w)

    # ---------------- head (logits) ----------------
    if n_embed % tile_v != 0 or tile_v > n_embed:
        tile_v = n_embed                                 # tiny / ragged vocab: single tile
    n_tiles = n_embed // tile_v

    # Tile-major repack: each vocab tile is one contiguous HBM block.
    head_w_tiled = head_w.reshape(size, n_tiles, tile_v).transpose(1, 0, 2)  # (n_tiles, size, tile_v)

    head_block_bytes = size * tile_v * 2 + tile_v * 4 + tile_v * 4
    vmem_head = int(min(vmem_budget,
                        max(16 << 20, 2 * head_block_bytes + (8 << 20))))

    logits = pl.pallas_call(
        rwkv_head_kernel,
        out_shape=jax.ShapeDtypeStruct((1, n_embed), jnp.float32),
        grid_spec=pltpu.PrefetchScalarGridSpec(
            num_scalar_prefetch=0,
            grid=(n_tiles,),
            in_specs=[
                pl.BlockSpec((1, size), lambda v: (0, 0)),               # x (resident)
                pl.BlockSpec((1, size, tile_v), lambda v: (v, 0, 0)),    # contiguous head_W tile
                pl.BlockSpec((1, tile_v), lambda v: (0, v)),             # head bias tile
            ],
            out_specs=pl.BlockSpec((1, tile_v), lambda v: (0, v)),       # lane-dense logits slab
        ),
        compiler_params=pltpu.CompilerParams(
            dimension_semantics=("parallel",),           # shards vocab tiles across TCs (v7x)
            vmem_limit_bytes=vmem_head),
    )(x_final, head_w_tiled, head_b)

    # Softmax over n_embed logits is negligible vs. the head GEMV; doing it in
    # JAX keeps the vocab grid fully parallel.
    return jax.nn.softmax(logits[0])                     # (n_embed,), matches PyTorch output


# ----------------------------------------------------------------------------
# Deterministic synthetic parameters (shapes follow the PyTorch __init__).
# ----------------------------------------------------------------------------
def init_params(key, n_layers, n_embed, size):
    ks = jax.random.split(key, 12)
    n_ln = 2 * n_layers + 2
    inv = 1.0 / jnp.sqrt(size)
    return {
        "emb":      0.1 * jax.random.normal(ks[0], (n_embed, size), jnp.float32),
        "ln_g":     1.0 + 0.1 * jax.random.normal(ks[1], (n_ln, size), jnp.float32),
        "ln_b":     0.1 * jax.random.normal(ks[2], (n_ln, size), jnp.float32),
        "tm_mix":   jax.random.uniform(ks[3], (3 * n_layers, size), jnp.float32),
        "tm_bonus": 0.1 * jax.random.normal(ks[4], (n_layers, size), jnp.float32),
        "tm_W":     inv * jax.random.normal(ks[5], (4 * n_layers, size, size), jnp.float32),
        "tm_b":     0.1 * jax.random.normal(ks[6], (4 * n_layers, size), jnp.float32),
        "tm_state": jnp.zeros((3 * n_layers, size), jnp.float32),   # last_x, num, den = 0
        "cm_mix":   jax.random.uniform(ks[7], (2 * n_layers, size), jnp.float32),
        "cm_W":     inv * jax.random.normal(ks[8], (3 * n_layers, size, size), jnp.float32),
        "cm_b":     0.1 * jax.random.normal(ks[9], (3 * n_layers, size), jnp.float32),
        "cm_state": jnp.zeros((n_layers, size), jnp.float32),        # last_x = 0
        "head_W":   inv * jax.random.normal(ks[10], (size, n_embed), jnp.float32),
        "head_b":   0.1 * jax.random.normal(ks[11], (1, n_embed), jnp.float32),
    }


# ----------------------------------------------------------------------------
# Pure-JAX reference (mirrors the PyTorch forward; same bf16 matmul rounding).
# ----------------------------------------------------------------------------
def rwkv_reference(token, p, n_layers):
    bf16 = jnp.bfloat16

    def lnorm(x, g, b):
        m = x.mean()
        v = ((x - m) ** 2).mean()
        return (x - m) * jax.lax.rsqrt(v + _EPS) * g + b

    def mm(x, W):
        return jnp.dot(x.astype(bf16), W.astype(bf16), preferred_element_type=jnp.float32)

    x = p["emb"][token]
    x = lnorm(x, p["ln_g"][0], p["ln_b"][0])
    for i in range(n_layers):
        x_ = lnorm(x, p["ln_g"][2 * i + 1], p["ln_b"][2 * i + 1])
        mk, mv, mr = (p["tm_mix"][3 * i + j] for j in range(3))
        lx, lnum, lden = (p["tm_state"][3 * i + j] for j in range(3))
        k = mm(x_ * mk + lx * (1 - mk), p["tm_W"][4 * i + 0]) + p["tm_b"][4 * i + 0]
        v = mm(x_ * mv + lx * (1 - mv), p["tm_W"][4 * i + 1]) + p["tm_b"][4 * i + 1]
        r = mm(x_ * mr + lx * (1 - mr), p["tm_W"][4 * i + 2]) + p["tm_b"][4 * i + 2]
        ebk = jnp.exp(p["tm_bonus"][i] + k)
        wkv = (lnum + ebk * v) / (lden + ebk)
        x = x + mm(jax.nn.sigmoid(r) * wkv, p["tm_W"][4 * i + 3]) + p["tm_b"][4 * i + 3]

        x_ = lnorm(x, p["ln_g"][2 * i + 2], p["ln_b"][2 * i + 2])
        cmk, cmr = p["cm_mix"][2 * i], p["cm_mix"][2 * i + 1]
        clx = p["cm_state"][i]
        k = mm(x_ * cmk + clx * (1 - cmk), p["cm_W"][3 * i + 0]) + p["cm_b"][3 * i + 0]
        r = mm(x_ * cmr + clx * (1 - cmr), p["cm_W"][3 * i + 1]) + p["cm_b"][3 * i + 1]
        vk = mm(jnp.maximum(k, 0.0) ** 2, p["cm_W"][3 * i + 2]) + p["cm_b"][3 * i + 2]
        x = x + jax.nn.sigmoid(r) * vk

    x = lnorm(x, p["ln_g"][-1], p["ln_b"][-1])
    logits = mm(x, p["head_W"]) + p["head_b"][0]
    return jax.nn.softmax(logits)


if __name__ == "__main__":
    n_layers, n_embed, size = 2, 1024, 128     # small but lane-aligned; 2 vocab tiles of 512
    params = init_params(jax.random.PRNGKey(0), n_layers, n_embed, size)
    token = jnp.array(7, dtype=jnp.int32)      # single token, as in the PyTorch module

    probs = rwkv_forward(token, params, n_layers, size, n_embed, tile_v=512)
    probs = jax.block_until_ready(probs)

    ref = rwkv_reference(token, params, n_layers)
    np.testing.assert_allclose(np.asarray(probs), np.asarray(ref), rtol=1e-2, atol=1e-6)
    assert probs.shape == (n_embed,)
    assert np.isfinite(np.asarray(probs)).all()
    print("KERNEL_OK")
</pallas_src>

<mosaic_0001>
module attributes {stable_mosaic.version = 11 : i64} {
  func.func @rwkv_layers_kernel(%arg0: i32, %arg1: memref<1x128xf32, #tpu.memory_space<vmem>>, %arg2: memref<4x128xf32, #tpu.memory_space<vmem>>, %arg3: memref<1x21x128xf32, #tpu.memory_space<vmem>>, %arg4: memref<1x7x128x128xbf16, #tpu.memory_space<vmem>>, %arg5: memref<1x128xf32, #tpu.memory_space<vmem>>, %arg6: memref<1x128xf32, #tpu.memory_space<vmem>>) attributes {dimension_semantics = [#tpu.dimension_semantics<arbitrary>], iteration_bounds = array<i64: 2>, scalar_prefetch = 0 : i64, scratch_operands = 1 : i64, tpu.core_type = #tpu.core_type<tc>, window_params = [{pipeline_mode = #tpu.pipeline_mode<synchronous>, transform_indices = @transform_0, window_bounds = array<i64: 1, 128>}, {pipeline_mode = #tpu.pipeline_mode<synchronous>, transform_indices = @transform_1, window_bounds = array<i64: 4, 128>}, {transform_indices = @transform_2, window_bounds = array<i64: 1, 21, 128>}, {transform_indices = @transform_3, window_bounds = array<i64: 1, 7, 128, 128>}, {pipeline_mode = #tpu.pipeline_mode<synchronous>, transform_indices = @transform_4, window_bounds = array<i64: 1, 128>}]} {
    %c0_i32 = arith.constant 0 : i32
    %0 = arith.cmpi eq, %arg0, %c0_i32 : i32
    %1 = arith.extui %0 : i1 to i32
    %c0_i32_0 = arith.constant 0 : i32
    %2 = arith.cmpi ne, %1, %c0_i32_0 : i32
    scf.if %2 {
      %c0_100 = arith.constant 0 : index
      %c0_101 = arith.constant 0 : index
      %174 = vector.load %arg1[%c0_100, %c0_101] : memref<1x128xf32, #tpu.memory_space<vmem>>, vector<1x128xf32>
      %c0_102 = arith.constant 0 : index
      %c0_103 = arith.constant 0 : index
      %175 = vector.load %arg2[%c0_102, %c0_103] : memref<4x128xf32, #tpu.memory_space<vmem>>, vector<1x128xf32>
      %c1_104 = arith.constant 1 : index
      %c0_105 = arith.constant 0 : index
      %176 = vector.load %arg2[%c1_104, %c0_105] : memref<4x128xf32, #tpu.memory_space<vmem>>, vector<1x128xf32>
      %cst_106 = arith.constant dense<0.000000e+00> : vector<1xf32>
      %177 = vector.multi_reduction <add>, %174, %cst_106 [1] : vector<1x128xf32> to vector<1xf32>
      %178 = vector.shape_cast %177 : vector<1xf32> to vector<1x1xf32>
      %cst_107 = arith.constant 1.280000e+02 : f32
      %179 = vector.broadcast %cst_107 : f32 to vector<1x1xf32>
      %180 = arith.divf %178, %179 : vector<1x1xf32>
      %181 = vector.broadcast %180 : vector<1x1xf32> to vector<1x128xf32>
      %182 = arith.subf %174, %181 : vector<1x128xf32>
      %183 = arith.mulf %182, %182 : vector<1x128xf32>
      %cst_108 = arith.constant dense<0.000000e+00> : vector<1xf32>
      %184 = vector.multi_reduction <add>, %183, %cst_108 [1] : vector<1x128xf32> to vector<1xf32>
      %185 = vector.shape_cast %184 : vector<1xf32> to vector<1x1xf32>
      %cst_109 = arith.constant 1.280000e+02 : f32
      %186 = vector.broadcast %cst_109 : f32 to vector<1x1xf32>
      %187 = arith.divf %185, %186 : vector<1x1xf32>
      %188 = vector.broadcast %180 : vector<1x1xf32> to vector<1x128xf32>
      %189 = arith.subf %174, %188 : vector<1x128xf32>
      %cst_110 = arith.constant 9.99999974E-6 : f32
      %190 = vector.broadcast %cst_110 : f32 to vector<1x1xf32>
      %191 = arith.addf %187, %190 : vector<1x1xf32>
      %192 = math.rsqrt %191 : vector<1x1xf32>
      %193 = vector.broadcast %192 : vector<1x1xf32> to vector<1x128xf32>
      %194 = arith.mulf %189, %193 : vector<1x128xf32>
      %195 = arith.mulf %194, %175 : vector<1x128xf32>
      %196 = arith.addf %195, %176 : vector<1x128xf32>
      %c0_111 = arith.constant 0 : index
      %c0_112 = arith.constant 0 : index
      %197 = vector.load %arg6[%c0_111, %c0_112] : memref<1x128xf32, #tpu.memory_space<vmem>>, vector<1x128xf32>
      tpu.vector_store %arg6[%c0_111, %c0_112], %196 {strides = array<i32>} : memref<1x128xf32, #tpu.memory_space<vmem>>, vector<1x128xf32>,
    } else {
    }
    %c0 = arith.constant 0 : index
    %c0_1 = arith.constant 0 : index
    %3 = vector.load %arg6[%c0, %c0_1] : memref<1x128xf32, #tpu.memory_space<vmem>>, vector<1x128xf32>
    %c0_2 = arith.constant 0 : index
    %c0_3 = arith.constant 0 : index
    %c0_4 = arith.constant 0 : index
    %4 = vector.load %arg3[%c0_2, %c0_3, %c0_4] : memref<1x21x128xf32, #tpu.memory_space<vmem>>, vector<1x1x128xf32>
    %5 = vector.shape_cast %4 : vector<1x1x128xf32> to vector<1x128xf32>
    %c0_5 = arith.constant 0 : index
    %c1 = arith.constant 1 : index
    %c0_6 = arith.constant 0 : index
    %6 = vector.load %arg3[%c0_5, %c1, %c0_6] : memref<1x21x128xf32, #tpu.memory_space<vmem>>, vector<1x1x128xf32>
    %7 = vector.shape_cast %6 : vector<1x1x128xf32> to vector<1x128xf32>
    %cst = arith.constant dense<0.000000e+00> : vector<1xf32>
    %8 = vector.multi_reduction <add>, %3, %cst [1] : vector<1x128xf32> to vector<1xf32>
    %9 = vector.shape_cast %8 : vector<1xf32> to vector<1x1xf32>
    %cst_7 = arith.constant 1.280000e+02 : f32
    %10 = vector.broadcast %cst_7 : f32 to vector<1x1xf32>
    %11 = arith.divf %9, %10 : vector<1x1xf32>
    %12 = vector.broadcast %11 : vector<1x1xf32> to vector<1x128xf32>
    %13 = arith.subf %3, %12 : vector<1x128xf32>
    %14 = arith.mulf %13, %13 : vector<1x128xf32>
    %cst_8 = arith.constant dense<0.000000e+00> : vector<1xf32>
    %15 = vector.multi_reduction <add>, %14, %cst_8 [1] : vector<1x128xf32> to vector<1xf32>
    %16 = vector.shape_cast %15 : vector<1xf32> to vector<1x1xf32>
    %cst_9 = arith.constant 1.280000e+02 : f32
    %17 = vector.broadcast %cst_9 : f32 to vector<1x1xf32>
    %18 = arith.divf %16, %17 : vector<1x1xf32>
    %19 = vector.broadcast %11 : vector<1x1xf32> to vector<1x128xf32>
    %20 = arith.subf %3, %19 : vector<1x128xf32>
    %cst_10 = arith.constant 9.99999974E-6 : f32
    %21 = vector.broadcast %cst_10 : f32 to vector<1x1xf32>
    %22 = arith.addf %18, %21 : vector<1x1xf32>
    %23 = math.rsqrt %22 : vector<1x1xf32>
    %24 = vector.broadcast %23 : vector<1x1xf32> to vector<1x128xf32>
    %25 = arith.mulf %20, %24 : vector<1x128xf32>
    %26 = arith.mulf %25, %5 : vector<1x128xf32>
    %27 = arith.addf %26, %7 : vector<1x128xf32>
    %c0_11 = arith.constant 0 : index
    %c12 = arith.constant 12 : index
    %c0_12 = arith.constant 0 : index
    %28 = vector.load %arg3[%c0_11, %c12, %c0_12] : memref<1x21x128xf32, #tpu.memory_space<vmem>>, vector<1x1x128xf32>
    %29 = vector.shape_cast %28 : vector<1x1x128xf32> to vector<1x128xf32>
    %c0_13 = arith.constant 0 : index
    %c13 = arith.constant 13 : index
    %c0_14 = arith.constant 0 : index
    %30 = vector.load %arg3[%c0_13, %c13, %c0_14] : memref<1x21x128xf32, #tpu.memory_space<vmem>>, vector<1x1x128xf32>
    %31 = vector.shape_cast %30 : vector<1x1x128xf32> to vector<1x128xf32>
    %c0_15 = arith.constant 0 : index
    %c14 = arith.constant 14 : index
    %c0_16 = arith.constant 0 : index
    %32 = vector.load %arg3[%c0_15, %c14, %c0_16] : memref<1x21x128xf32, #tpu.memory_space<vmem>>, vector<1x1x128xf32>
    %33 = vector.shape_cast %32 : vector<1x1x128xf32> to vector<1x128xf32>
    %c0_17 = arith.constant 0 : index
    %c4 = arith.constant 4 : index
    %c0_18 = arith.constant 0 : index
    %34 = vector.load %arg3[%c0_17, %c4, %c0_18] : memref<1x21x128xf32, #tpu.memory_space<vmem>>, vector<1x1x128xf32>
    %35 = vector.shape_cast %34 : vector<1x1x128xf32> to vector<1x128xf32>
    %c0_19 = arith.constant 0 : index
    %c5 = arith.constant 5 : index
    %c0_20 = arith.constant 0 : index
    %36 = vector.load %arg3[%c0_19, %c5, %c0_20] : memref<1x21x128xf32, #tpu.memory_space<vmem>>, vector<1x1x128xf32>
    %37 = vector.shape_cast %36 : vector<1x1x128xf32> to vector<1x128xf32>
    %c0_21 = arith.constant 0 : index
    %c6 = arith.constant 6 : index
    %c0_22 = arith.constant 0 : index
    %38 = vector.load %arg3[%c0_21, %c6, %c0_22] : memref<1x21x128xf32, #tpu.memory_space<vmem>>, vector<1x1x128xf32>
    %39 = vector.shape_cast %38 : vector<1x1x128xf32> to vector<1x128xf32>
    %40 = arith.mulf %27, %35 : vector<1x128xf32>
    %cst_23 = arith.constant 1.000000e+00 : f32
    %41 = vector.broadcast %cst_23 : f32 to vector<1x128xf32>
    %42 = arith.subf %41, %35 : vector<1x128xf32>
    %43 = arith.mulf %29, %42 : vector<1x128xf32>
    %44 = arith.addf %40, %43 : vector<1x128xf32>
    %c0_24 = arith.constant 0 : index
    %c0_25 = arith.constant 0 : index
    %c0_26 = arith.constant 0 : index
    %c0_27 = arith.constant 0 : index
    %45 = vector.load %arg4[%c0_24, %c0_25, %c0_26, %c0_27] : memref<1x7x128x128xbf16, #tpu.memory_space<vmem>>, vector<1x1x128x128xbf16>
    %46 = vector.shape_cast %45 : vector<1x1x128x128xbf16> to vector<128x128xbf16>
    %47 = arith.truncf %44 : vector<1x128xf32> to vector<1x128xbf16>
    %cst_28 = arith.constant dense<0.000000e+00> : vector<1x128xf32>
    %48 = tpu.matmul %47, %46, %cst_28 {dimension_numbers = #tpu.dot_dimension_numbers<[1], [0], [0], [1], [0, 0, 1, 1], [], []>} : vector<1x128xbf16>, vector<128x128xbf16>, vector<1x128xf32> -> vector<1x128xf32>
    %c0_29 = arith.constant 0 : index
    %c8 = arith.constant 8 : index
    %c0_30 = arith.constant 0 : index
    %49 = vector.load %arg3[%c0_29, %c8, %c0_30] : memref<1x21x128xf32, #tpu.memory_space<vmem>>, vector<1x1x128xf32>
    %50 = vector.shape_cast %49 : vector<1x1x128xf32> to vector<1x128xf32>
    %51 = arith.addf %48, %50 : vector<1x128xf32>
    %52 = arith.mulf %27, %37 : vector<1x128xf32>
    %cst_31 = arith.constant 1.000000e+00 : f32
    %53 = vector.broadcast %cst_31 : f32 to vector<1x128xf32>
    %54 = arith.subf %53, %37 : vector<1x128xf32>
    %55 = arith.mulf %29, %54 : vector<1x128xf32>
    %56 = arith.addf %52, %55 : vector<1x128xf32>
    %c0_32 = arith.constant 0 : index
    %c1_33 = arith.constant 1 : index
    %c0_34 = arith.constant 0 : index
    %c0_35 = arith.constant 0 : index
    %57 = vector.load %arg4[%c0_32, %c1_33, %c0_34, %c0_35] : memref<1x7x128x128xbf16, #tpu.memory_space<vmem>>, vector<1x1x128x128xbf16>
    %58 = vector.shape_cast %57 : vector<1x1x128x128xbf16> to vector<128x128xbf16>
    %59 = arith.truncf %56 : vector<1x128xf32> to vector<1x128xbf16>
    %cst_36 = arith.constant dense<0.000000e+00> : vector<1x128xf32>
    %60 = tpu.matmul %59, %58, %cst_36 {dimension_numbers = #tpu.dot_dimension_numbers<[1], [0], [0], [1], [0, 0, 1, 1], [], []>} : vector<1x128xbf16>, vector<128x128xbf16>, vector<1x128xf32> -> vector<1x128xf32>
    %c0_37 = arith.constant 0 : index
    %c9 = arith.constant 9 : index
    %c0_38 = arith.constant 0 : index
    %61 = vector.load %arg3[%c0_37, %c9, %c0_38] : memref<1x21x128xf32, #tpu.memory_space<vmem>>, vector<1x1x128xf32>
    %62 = vector.shape_cast %61 : vector<1x1x128xf32> to vector<1x128xf32>
    %63 = arith.addf %60, %62 : vector<1x128xf32>
    %64 = arith.mulf %27, %39 : vector<1x128xf32>
    %cst_39 = arith.constant 1.000000e+00 : f32
    %65 = vector.broadcast %cst_39 : f32 to vector<1x128xf32>
    %66 = arith.subf %65, %39 : vector<1x128xf32>
    %67 = arith.mulf %29, %66 : vector<1x128xf32>
    %68 = arith.addf %64, %67 : vector<1x128xf32>
    %c0_40 = arith.constant 0 : index
    %c2 = arith.constant 2 : index
    %c0_41 = arith.constant 0 : index
    %c0_42 = arith.constant 0 : index
    %69 = vector.load %arg4[%c0_40, %c2, %c0_41, %c0_42] : memref<1x7x128x128xbf16, #tpu.memory_space<vmem>>, vector<1x1x128x128xbf16>
    %70 = vector.shape_cast %69 : vector<1x1x128x128xbf16> to vector<128x128xbf16>
    %71 = arith.truncf %68 : vector<1x128xf32> to vector<1x128xbf16>
    %cst_43 = arith.constant dense<0.000000e+00> : vector<1x128xf32>
    %72 = tpu.matmul %71, %70, %cst_43 {dimension_numbers = #tpu.dot_dimension_numbers<[1], [0], [0], [1], [0, 0, 1, 1], [], []>} : vector<1x128xbf16>, vector<128x128xbf16>, vector<1x128xf32> -> vector<1x128xf32>
    %c0_44 = arith.constant 0 : index
    %c10 = arith.constant 10 : index
    %c0_45 = arith.constant 0 : index
    %73 = vector.load %arg3[%c0_44, %c10, %c0_45] : memref<1x21x128xf32, #tpu.memory_space<vmem>>, vector<1x1x128xf32>
    %74 = vector.shape_cast %73 : vector<1x1x128xf32> to vector<1x128xf32>
    %75 = arith.addf %72, %74 : vector<1x128xf32>
    %c0_46 = arith.constant 0 : index
    %c7 = arith.constant 7 : index
    %c0_47 = arith.constant 0 : index
    %76 = vector.load %arg3[%c0_46, %c7, %c0_47] : memref<1x21x128xf32, #tpu.memory_space<vmem>>, vector<1x1x128xf32>
    %77 = vector.shape_cast %76 : vector<1x1x128xf32> to vector<1x128xf32>
    %78 = arith.addf %77, %51 : vector<1x128xf32>
    %79 = math.exp %78 : vector<1x128xf32>
    %80 = arith.mulf %79, %63 : vector<1x128xf32>
    %81 = arith.addf %31, %80 : vector<1x128xf32>
    %82 = arith.addf %33, %79 : vector<1x128xf32>
    %83 = tpu.reciprocal %82 {approx = true} : vector<1x128xf32> -> vector<1x128xf32>
    %84 = arith.mulf %81, %83 : vector<1x128xf32>
    %85 = arith.negf %75 : vector<1x128xf32>
    %86 = math.exp %85 : vector<1x128xf32>
    %cst_48 = arith.constant 1.000000e+00 : f32
    %87 = vector.broadcast %cst_48 : f32 to vector<1x128xf32>
    %88 = arith.addf %87, %86 : vector<1x128xf32>
    %89 = arith.divf %87, %88 : vector<1x128xf32>
    %90 = arith.mulf %89, %84 : vector<1x128xf32>
    %c0_49 = arith.constant 0 : index
    %c3 = arith.constant 3 : index
    %c0_50 = arith.constant 0 : index
    %c0_51 = arith.constant 0 : index
    %91 = vector.load %arg4[%c0_49, %c3, %c0_50, %c0_51] : memref<1x7x128x128xbf16, #tpu.memory_space<vmem>>, vector<1x1x128x128xbf16>
    %92 = vector.shape_cast %91 : vector<1x1x128x128xbf16> to vector<128x128xbf16>
    %93 = arith.truncf %90 : vector<1x128xf32> to vector<1x128xbf16>
    %cst_52 = arith.constant dense<0.000000e+00> : vector<1x128xf32>
    %94 = tpu.matmul %93, %92, %cst_52 {dimension_numbers = #tpu.dot_dimension_numbers<[1], [0], [0], [1], [0, 0, 1, 1], [], []>} : vector<1x128xbf16>, vector<128x128xbf16>, vector<1x128xf32> -> vector<1x128xf32>
    %95 = arith.addf %3, %94 : vector<1x128xf32>
    %c0_53 = arith.constant 0 : index
    %c11 = arith.constant 11 : index
    %c0_54 = arith.constant 0 : index
    %96 = vector.load %arg3[%c0_53, %c11, %c0_54] : memref<1x21x128xf32, #tpu.memory_space<vmem>>, vector<1x1x128xf32>
    %97 = vector.shape_cast %96 : vector<1x1x128xf32> to vector<1x128xf32>
    %98 = arith.addf %95, %97 : vector<1x128xf32>
    %c0_55 = arith.constant 0 : index
    %c2_56 = arith.constant 2 : index
    %c0_57 = arith.constant 0 : index
    %99 = vector.load %arg3[%c0_55, %c2_56, %c0_57] : memref<1x21x128xf32, #tpu.memory_space<vmem>>, vector<1x1x128xf32>
    %100 = vector.shape_cast %99 : vector<1x1x128xf32> to vector<1x128xf32>
    %c0_58 = arith.constant 0 : index
    %c3_59 = arith.constant 3 : index
    %c0_60 = arith.constant 0 : index
    %101 = vector.load %arg3[%c0_58, %c3_59, %c0_60] : memref<1x21x128xf32, #tpu.memory_space<vmem>>, vector<1x1x128xf32>
    %102 = vector.shape_cast %101 : vector<1x1x128xf32> to vector<1x128xf32>
    %cst_61 = arith.constant dense<0.000000e+00> : vector<1xf32>
    %103 = vector.multi_reduction <add>, %98, %cst_61 [1] : vector<1x128xf32> to vector<1xf32>
    %104 = vector.shape_cast %103 : vector<1xf32> to vector<1x1xf32>
    %cst_62 = arith.constant 1.280000e+02 : f32
    %105 = vector.broadcast %cst_62 : f32 to vector<1x1xf32>
    %106 = arith.divf %104, %105 : vector<1x1xf32>
    %107 = vector.broadcast %106 : vector<1x1xf32> to vector<1x128xf32>
    %108 = arith.subf %98, %107 : vector<1x128xf32>
    %109 = arith.mulf %108, %108 : vector<1x128xf32>
    %cst_63 = arith.constant dense<0.000000e+00> : vector<1xf32>
    %110 = vector.multi_reduction <add>, %109, %cst_63 [1] : vector<1x128xf32> to vector<1xf32>
    %111 = vector.shape_cast %110 : vector<1xf32> to vector<1x1xf32>
    %cst_64 = arith.constant 1.280000e+02 : f32
    %112 = vector.broadcast %cst_64 : f32 to vector<1x1xf32>
    %113 = arith.divf %111, %112 : vector<1x1xf32>
    %114 = vector.broadcast %106 : vector<1x1xf32> to vector<1x128xf32>
    %115 = arith.subf %98, %114 : vector<1x128xf32>
    %cst_65 = arith.constant 9.99999974E-6 : f32
    %116 = vector.broadcast %cst_65 : f32 to vector<1x1xf32>
    %117 = arith.addf %113, %116 : vector<1x1xf32>
    %118 = math.rsqrt %117 : vector<1x1xf32>
    %119 = vector.broadcast %118 : vector<1x1xf32> to vector<1x128xf32>
    %120 = arith.mulf %115, %119 : vector<1x128xf32>
    %121 = arith.mulf %120, %100 : vector<1x128xf32>
    %122 = arith.addf %121, %102 : vector<1x128xf32>
    %c0_66 = arith.constant 0 : index
    %c20 = arith.constant 20 : index
    %c0_67 = arith.constant 0 : index
    %123 = vector.load %arg3[%c0_66, %c20, %c0_67] : memref<1x21x128xf32, #tpu.memory_space<vmem>>, vector<1x1x128xf32>
    %124 = vector.shape_cast %123 : vector<1x1x128xf32> to vector<1x128xf32>
    %c0_68 = arith.constant 0 : index
    %c15 = arith.constant 15 : index
    %c0_69 = arith.constant 0 : index
    %125 = vector.load %arg3[%c0_68, %c15, %c0_69] : memref<1x21x128xf32, #tpu.memory_space<vmem>>, vector<1x1x128xf32>
    %126 = vector.shape_cast %125 : vector<1x1x128xf32> to vector<1x128xf32>
    %c0_70 = arith.constant 0 : index
    %c16 = arith.constant 16 : index
    %c0_71 = arith.constant 0 : index
    %127 = vector.load %arg3[%c0_70, %c16, %c0_71] : memref<1x21x128xf32, #tpu.memory_space<vmem>>, vector<1x1x128xf32>
    %128 = vector.shape_cast %127 : vector<1x1x128xf32> to vector<1x128xf32>
    %129 = arith.mulf %122, %126 : vector<1x128xf32>
    %cst_72 = arith.constant 1.000000e+00 : f32
    %130 = vector.broadcast %cst_72 : f32 to vector<1x128xf32>
    %131 = arith.subf %130, %126 : vector<1x128xf32>
    %132 = arith.mulf %124, %131 : vector<1x128xf32>
    %133 = arith.addf %129, %132 : vector<1x128xf32>
    %c0_73 = arith.constant 0 : index
    %c4_74 = arith.constant 4 : index
    %c0_75 = arith.constant 0 : index
    %c0_76 = arith.constant 0 : index
    %134 = vector.load %arg4[%c0_73, %c4_74, %c0_75, %c0_76] : memref<1x7x128x128xbf16, #tpu.memory_space<vmem>>, vector<1x1x128x128xbf16>
    %135 = vector.shape_cast %134 : vector<1x1x128x128xbf16> to vector<128x128xbf16>
    %136 = arith.truncf %133 : vector<1x128xf32> to vector<1x128xbf16>
    %cst_77 = arith.constant dense<0.000000e+00> : vector<1x128xf32>
    %137 = tpu.matmul %136, %135, %cst_77 {dimension_numbers = #tpu.dot_dimension_numbers<[1], [0], [0], [1], [0, 0, 1, 1], [], []>} : vector<1x128xbf16>, vector<128x128xbf16>, vector<1x128xf32> -> vector<1x128xf32>
    %c0_78 = arith.constant 0 : index
    %c17 = arith.constant 17 : index
    %c0_79 = arith.constant 0 : index
    %138 = vector.load %arg3[%c0_78, %c17, %c0_79] : memref<1x21x128xf32, #tpu.memory_space<vmem>>, vector<1x1x128xf32>
    %139 = vector.shape_cast %138 : vector<1x1x128xf32> to vector<1x128xf32>
    %140 = arith.addf %137, %139 : vector<1x128xf32>
    %141 = arith.mulf %122, %128 : vector<1x128xf32>
    %cst_80 = arith.constant 1.000000e+00 : f32
    %142 = vector.broadcast %cst_80 : f32 to vector<1x128xf32>
    %143 = arith.subf %142, %128 : vector<1x128xf32>
    %144 = arith.mulf %124, %143 : vector<1x128xf32>
    %145 = arith.addf %141, %144 : vector<1x128xf32>
    %c0_81 = arith.constant 0 : index
    %c5_82 = arith.constant 5 : index
    %c0_83 = arith.constant 0 : index
    %c0_84 = arith.constant 0 : index
    %146 = vector.load %arg4[%c0_81, %c5_82, %c0_83, %c0_84] : memref<1x7x128x128xbf16, #tpu.memory_space<vmem>>, vector<1x1x128x128xbf16>
    %147 = vector.shape_cast %146 : vector<1x1x128x128xbf16> to vector<128x128xbf16>
    %148 = arith.truncf %145 : vector<1x128xf32> to vector<1x128xbf16>
    %cst_85 = arith.constant dense<0.000000e+00> : vector<1x128xf32>
    %149 = tpu.matmul %148, %147, %cst_85 {dimension_numbers = #tpu.dot_dimension_numbers<[1], [0], [0], [1], [0, 0, 1, 1], [], []>} : vector<1x128xbf16>, vector<128x128xbf16>, vector<1x128xf32> -> vector<1x128xf32>
    %c0_86 = arith.constant 0 : index
    %c18 = arith.constant 18 : index
    %c0_87 = arith.constant 0 : index
    %150 = vector.load %arg3[%c0_86, %c18, %c0_87] : memref<1x21x128xf32, #tpu.memory_space<vmem>>, vector<1x1x128xf32>
    %151 = vector.shape_cast %150 : vector<1x1x128xf32> to vector<1x128xf32>
    %152 = arith.addf %149, %151 : vector<1x128xf32>
    %cst_88 = arith.constant 0.000000e+00 : f32
    %153 = vector.broadcast %cst_88 : f32 to vector<1x128xf32>
    %154 = arith.maximumf %140, %153 : vector<1x128xf32>
    %155 = arith.mulf %154, %154 : vector<1x128xf32>
    %c0_89 = arith.constant 0 : index
    %c6_90 = arith.constant 6 : index
    %c0_91 = arith.constant 0 : index
    %c0_92 = arith.constant 0 : index
    %156 = vector.load %arg4[%c0_89, %c6_90, %c0_91, %c0_92] : memref<1x7x128x128xbf16, #tpu.memory_space<vmem>>, vector<1x1x128x128xbf16>
    %157 = vector.shape_cast %156 : vector<1x1x128x128xbf16> to vector<128x128xbf16>
    %158 = arith.truncf %155 : vector<1x128xf32> to vector<1x128xbf16>
    %cst_93 = arith.constant dense<0.000000e+00> : vector<1x128xf32>
    %159 = tpu.matmul %158, %157, %cst_93 {dimension_numbers = #tpu.dot_dimension_numbers<[1], [0], [0], [1], [0, 0, 1, 1], [], []>} : vector<1x128xbf16>, vector<128x128xbf16>, vector<1x128xf32> -> vector<1x128xf32>
    %c0_94 = arith.constant 0 : index
    %c19 = arith.constant 19 : index
    %c0_95 = arith.constant 0 : index
    %160 = vector.load %arg3[%c0_94, %c19, %c0_95] : memref<1x21x128xf32, #tpu.memory_space<vmem>>, vector<1x1x128xf32>
    %161 = vector.shape_cast %160 : vector<1x1x128xf32> to vector<1x128xf32>
    %162 = arith.addf %159, %161 : vector<1x128xf32>
    %163 = arith.negf %152 : vector<1x128xf32>
    %164 = math.exp %163 : vector<1x128xf32>
    %cst_96 = arith.constant 1.000000e+00 : f32
    %165 = vector.broadcast %cst_96 : f32 to vector<1x128xf32>
    %166 = arith.addf %165, %164 : vector<1x128xf32>
    %167 = arith.divf %165, %166 : vector<1x128xf32>
    %168 = arith.mulf %167, %162 : vector<1x128xf32>
    %169 = arith.addf %98, %168 : vector<1x128xf32>
    %c0_97 = arith.constant 0 : index
    %c0_98 = arith.constant 0 : index
    %170 = vector.load %arg6[%c0_97, %c0_98] : memref<1x128xf32, #tpu.memory_space<vmem>>, vector<1x128xf32>
    tpu.vector_store %arg6[%c0_97, %c0_98], %169 {strides = array<i32>} : memref<1x128xf32, #tpu.memory_space<vmem>>, vector<1x128xf32>,
    %c1_i32 = arith.constant 1 : i32
    %171 = arith.cmpi eq, %arg0, %c1_i32 : i32
    %172 = arith.extui %171 : i1 to i32
    %c0_i32_99 = arith.constant 0 : i32
    %173 = arith.cmpi ne, %172, %c0_i32_99 : i32
    scf.if %173 {
      %c2_100 = arith.constant 2 : index
      %c0_101 = arith.constant 0 : index
      %174 = vector.load %arg2[%c2_100, %c0_101] : memref<4x128xf32, #tpu.memory_space<vmem>>, vector<1x128xf32>
      %c3_102 = arith.constant 3 : index
      %c0_103 = arith.constant 0 : index
      %175 = vector.load %arg2[%c3_102, %c0_103] : memref<4x128xf32, #tpu.memory_space<vmem>>, vector<1x128xf32>
      %cst_104 = arith.constant dense<0.000000e+00> : vector<1xf32>
      %176 = vector.multi_reduction <add>, %169, %cst_104 [1] : vector<1x128xf32> to vector<1xf32>
      %177 = vector.shape_cast %176 : vector<1xf32> to vector<1x1xf32>
      %cst_105 = arith.constant 1.280000e+02 : f32
      %178 = vector.broadcast %cst_105 : f32 to vector<1x1xf32>
      %179 = arith.divf %177, %178 : vector<1x1xf32>
      %180 = vector.broadcast %179 : vector<1x1xf32> to vector<1x128xf32>
      %181 = arith.subf %169, %180 : vector<1x128xf32>
      %182 = arith.mulf %181, %181 : vector<1x128xf32>
      %cst_106 = arith.constant dense<0.000000e+00> : vector<1xf32>
      %183 = vector.multi_reduction <add>, %182, %cst_106 [1] : vector<1x128xf32> to vector<1xf32>
      %184 = vector.shape_cast %183 : vector<1xf32> to vector<1x1xf32>
      %cst_107 = arith.constant 1.280000e+02 : f32
      %185 = vector.broadcast %cst_107 : f32 to vector<1x1xf32>
      %186 = arith.divf %184, %185 : vector<1x1xf32>
      %187 = vector.broadcast %179 : vector<1x1xf32> to vector<1x128xf32>
      %188 = arith.subf %169, %187 : vector<1x128xf32>
      %cst_108 = arith.constant 9.99999974E-6 : f32
      %189 = vector.broadcast %cst_108 : f32 to vector<1x1xf32>
      %190 = arith.addf %186, %189 : vector<1x1xf32>
      %191 = math.rsqrt %190 : vector<1x1xf32>
      %192 = vector.broadcast %191 : vector<1x1xf32> to vector<1x128xf32>
      %193 = arith.mulf %188, %192 : vector<1x128xf32>
      %194 = arith.mulf %193, %174 : vector<1x128xf32>
      %195 = arith.addf %194, %175 : vector<1x128xf32>
      %c0_109 = arith.constant 0 : index
      %c0_110 = arith.constant 0 : index
      %196 = vector.load %arg5[%c0_109, %c0_110] : memref<1x128xf32, #tpu.memory_space<vmem>>, vector<1x128xf32>
      tpu.vector_store %arg5[%c0_109, %c0_110], %195 {strides = array<i32>} : memref<1x128xf32, #tpu.memory_space<vmem>>, vector<1x128xf32>,
    } else {
    }
    return
  }
  func.func @transform_0(%arg0: i32) -> (i32, i32) {
    %c0_i32 = arith.constant 0 : i32
    %c0_i32_0 = arith.constant 0 : i32
    %c0_i32_1 = arith.constant 0 : i32
    return %c0_i32, %c0_i32_0 : i32, i32
  }
  func.func @transform_1(%arg0: i32) -> (i32, i32) {
    %c0_i32 = arith.constant 0 : i32
    %c0_i32_0 = arith.constant 0 : i32
    %c0_i32_1 = arith.constant 0 : i32
    return %c0_i32, %c0_i32_0 : i32, i32
  }
  func.func @transform_2(%arg0: i32) -> (i32, i32, i32) {
    %c0_i32 = arith.constant 0 : i32
    %c0_i32_0 = arith.constant 0 : i32
    %c0_i32_1 = arith.constant 0 : i32
    return %arg0, %c0_i32, %c0_i32_0 : i32, i32, i32
  }
  func.func @transform_3(%arg0: i32) -> (i32, i32, i32, i32) {
    %c0_i32 = arith.constant 0 : i32
    %c0_i32_0 = arith.constant 0 : i32
    %c0_i32_1 = arith.constant 0 : i32
    %c0_i32_2 = arith.constant 0 : i32
    return %arg0, %c0_i32, %c0_i32_0, %c0_i32_1 : i32, i32, i32, i32
  }
  func.func @transform_4(%arg0: i32) -> (i32, i32) {
    %c0_i32 = arith.constant 0 : i32
    %c0_i32_0 = arith.constant 0 : i32
    %c0_i32_1 = arith.constant 0 : i32
    return %c0_i32, %c0_i32_0 : i32, i32
  }
}

</mosaic_0001>

<bundles_post_ra>
// kernel: tpu_custom_call.1
= control target key start
LH: loop header
LB: loop body
LE: loop exit
PB: predicated region body
PF: predicated region fallthrough
CT: control target
= control target key end

     0   :  { %9 = vsyncpa [#allocation4], 0  ;;  %s2125_s0 = inlined_call_operand.vmem [shape: f32[1,128], index: 0, kind: input, shape index: {}]   ;;  %s2126_s1 = inlined_call_operand.vmem [shape: f32[4,128], index: 1, kind: input, shape index: {}]   ;;  %s2127_s2 = inlined_call_operand.vmem [shape: f32[2,21,128], index: 2, kind: input, shape index: {}]   ;;  %s2128_s3 = inlined_call_operand.hbm [shape: bf16[2,7,128,128], index: 3, kind: input, shape index: {}]   ;;  %s2129_s4 = inlined_call_operand.hbm [shape: f32[1,128], index: 4, kind: output, shape index: {}]  }
   0x1   :  { %11 = vsyncpa [#allocation4 + $0x1], 0 }
   0x2   :  { %12 = vsyncpa [#allocation5], 0  ;;  %s1810_s15 = smov 0   ;;  %s1812_s16 = smov 0  }
   0x3   :  { %s1814_s17 = smov 0   ;;  %s1816_s18 = smov 0  }
   0x4 LB: > { %s1829_s19 = sadd.s32 4294967295, %s1777_s18   ;;  %s1832_s20 = sadd.s32 1, %s1777_s18   ;;  %s1777_s18 = sphi %s1816_s18, %s2136_s18   ;;  %s1773_s17 = sphi %s1814_s17, %s2135_s17   ;;  %s1769_s16 = sphi %s1812_s16, %s2134_s16   ;;  %s1765_s15 = sphi %s1810_s15, %s2133_s15  }
   0x5   : > { %s90_s21 = ssub.s32 %s1777_s18, %s1832_s20  ;;  %s93_s22 = sadd.s32 1, %s1773_s17 }
   0x6   : > { %p91_p0 = scmp.eq.s32.totalorder %s90_s21, 0  ;;  %p100_p1 = scmp.ne.s32.totalorder %s1773_s17, %s1769_s16 }
   0x7   : > { %p101_p2 = scmp.eq.s32.totalorder %s1777_s18, 0  ;;  %p106_p3 = scmp.ne.s32.totalorder %s1769_s16, %s1765_s15 }
   0x8   : > { %s1842_s23 = scalar_select %p91_p0, %s1773_s17, %s93_s22  }
   0x9   : > { %p102_p4 = por %p101_p2, %p100_p1  ;;  %p107_p5 = scmp.eq.s32.totalorder %s1829_s19, 0 }
   0xa   : > { %p1567_p6 = scmp.lt.s32.totalorder %s1777_s18, 2  ;;  %s165_s25 = sand.u32 1, %s1773_s17  }
   0xb   : > { %p1846_p7 = por %p107_p5, %p106_p3  ;;  %s1553_s26 = smul.u32 448, %s165_s25 }
   0xc   : > { %s1554_s27 = smul.u32 7168, %s1777_s18  ;;  %p1852_p8 = pnand %p1567_p6, %p102_p4 }
   0xd   : > { %s169_s6 = scalar_lea.vmem [#allocation3], %s1553_s26  ;;  %s1864_s8 = scalar_lea.sflag [#allocation4], %s165_s25 }
   0xe   : > { %s1859_s5 = scalar_lea.hbm %s2128_s3, %s1554_s27  ;;  %s176_s7 = sshll.u32 %s169_s6, 4  ;;  %s1861_s7 = int_to_ptr.vmem [resolvable:$true] %s176_s7 }
   0xf   : > { %s1683_s9 = scalar_lea.hbm %s1859_s5, 7168  ;;  %p1685_p11 = pneg %p1852_p8 }
  0x10   : > { %p1684_p10 = scmp.ne.s32.totalorder %s1859_s5, %s1683_s9  ;;  %s1688_s12 = scalar_lea.hbm %s2128_s3, 14336 }
  0x11   : > { %p1689_p0 = scmp.lt.u32.totalorder %s1859_s5, %s2128_s3  ;;  %p1690_p1 = scmp.lt.u32.totalorder %s1688_s12, %s1683_s9 }
  0x12   : > { %p1686_p12 = pnand %p1685_p11, %p1684_p10  ;;  %p1692_p3 = scmp.lt.u32.totalorder %s1683_s9, %s1859_s5 }
  0x13   : > { %p1691_p2 = por %p1690_p1, %p1689_p0 }
  0x14   : > { %p1687_p13 = pneg %p1686_p12 }
  0x15   : > { %p1693_p4 = por %p1692_p3, %p1691_p2 }
  0x17   : > { %p1694_p5 = pnand %p1693_p4, %p1687_p13 }
  0x19   : > { %1697 = shalt.err (!%p1694_p5)
}
  0x1a   : > { %s1698_s15 = scalar_lea.vmem %s1861_s7, 7168  ;;  %s1779_s21 = smov [#allocation3]  }
  0x1b   : > { %p1699_p6 = scmp.ne.s32.totalorder %s1861_s7, %s1698_s15  ;;  %s1703_s22 = sshll.u32 %s1779_s21, 4  ;;  %s1704_s22 = int_to_ptr.vmem [resolvable:$false] %s1703_s22 }
  0x1c   : > { %s1705_s25 = scalar_lea.vmem %s1704_s22, 14336  ;;  %p1706_p9 = scmp.lt.s32.totalorder %s1861_s7, %s1704_s22 }
  0x1d   : > { %p1701_p10 = pnand %p1699_p6, %p1685_p11  ;;  %p1707_p0 = scmp.lt.s32.totalorder %s1705_s25, %s1698_s15 }
  0x1f   : > { %p1702_p12 = pneg %p1701_p10  ;;  %p1708_p1 = por %p1707_p0, %p1706_p9 }
  0x21   : > { %p1709_p2 = pnand %p1708_p1, %p1702_p12 }
  0x23   : > { %1712 = shalt.err (!%p1709_p2)
}
  0x24   : > { %s1780_s26 = smov 64   ;;  %s1781_s27 = smov 4  }
  0x25   : > { %1566 = dma.hbm_to_vmem [thread:$0]  (!%p1852_p8), %s1859_s5, 7168, %s1861_s7, %s1864_s8, %s1780_s26, %s1780_s26, %s1781_s27  }
  0x26   : > { %p184_p11 = scmp.lt.s32.totalorder %s1777_s18, 3  ;;  %p2132_p13 = scmp.ge.s32.totalorder %s1777_s18, 1 }
  0x28   : > { %p185_p3 = pnand %p2132_p13, %p184_p11 }
  0x29   : > { %s190_s29 = sand.u32 (!%p185_p3), 1, %s1769_s16  }
  0x2a   : > { %188 = sbr.rel (%p185_p3) target bundleno = 2281 (0x8e9), region = 36  ;;  %s191_s6 = scalar_lea.sflag (!%p185_p3), [#allocation4], %s190_s29 }
  0x2b   : > { %s1555_s30 = smul.u32 (!%p185_p3), 448, %s190_s29 }
  0x2d   : > { %s1896_s9 = scalar_lea.vmem (!%p185_p3), [#allocation3], %s1555_s30 }
  0x31   : > { %1756 = dma.done.wait (%p1846_p7), %s191_s6, 7168  }
  0x32   : > { %1758 = vsyncadd (%p1846_p7), %s191_s6, 4294960128  ;;  %p219_p9 = scmp.lt.s32.totalorder %s1829_s19, 1  ;;  %p1190_p8 = scmp.ne.s32.totalorder %s1829_s19, 0 }
  0x33   : > { %v229_v0 = vld [vmem:[%s2125_s0] sm:$0x1] (!%p1190_p8)  ;;  %vm232_vm0 = vcmask (!%p1190_p8), 1040384   ;;  %v231_v13 = vld [vmem:[%s2126_s1 + $0x1] sm:$0x1] (!%p1190_p8) }
  0x34   : > { %s220_s28 = scalar_select %p219_p9, %s1829_s19, 1 }
  0x35   : > { %228 = sbr.rel (%p1190_p8) target bundleno = 367 (0x16f), region = 44  ;;  %v233_v1 = vsel (!%p1190_p8), %vm232_vm0, %v229_v0, 0.0  ;;  %v230_v11 = vld [vmem:[%s2126_s1] sm:$0x1] (!%p1190_p8) }
  0x36   : > { %s1556_s5 = smul.u32 24, %s220_s28  ;;  %234 = vadd.xlane.f32.xlu0 (!%p1190_p8), %v233_v1 }
  0x38   : > { %s1907_s8 = scalar_lea.vmem %s2127_s2, %s1556_s5 }
  0xc3   : > { %v235_v2 = vpop.xlane.xlu0 %234 }
  0xc4   : > { %v237_v3 = vmul.f32 0.0078125, %v235_v2 }
  0xc6   : > { %v238_v4 = vsub.f32 %v229_v0, %v237_v3 }
  0xc8   : > { %v239_v5 = vmul.f32 %v238_v4, %v238_v4 }
  0xca   : > { %v240_v6 = vsel %vm232_vm0, %v239_v5, 0.0 }
  0xcb   : > { %241 = vadd.xlane.f32.xlu0 %v240_v6 }
 0x158   : > { %v242_v7 = vpop.xlane.xlu0 %241 }
 0x159   : > { %v243_v8 = vmul.f32 0.0078125, %v242_v7 }
 0x15b   : > { %v244_v9 = vadd.f32 1e-05, %v243_v8 }
 0x15d   : > { %1607 = vrsqrt.f32 %v244_v9 }
 0x167   : > { %v1608_v10 = vpop.eup %1607 }
 0x168   : > { %v246_v12 = vmul.f32 %v1608_v10, %v238_v4 }
 0x16a   : > { %v247_v14 = vmul.f32 %v246_v12, %v230_v11 }
 0x16c   : > { %v248_v15 = vadd.f32 %v247_v14, %v231_v13 }
 0x16e   : > { %249 = vst [vmem:[#allocation2] sm:$0x1] %v248_v15 }
 0x16f PF: > { %vm253_vm1 = vcmask 1040384   ;;  %v1609_v18 = vld [vmem:[%s1896_s9] sm:$0xff]   ;;  %v1611_v20 = vld [vmem:[%s1896_s9 + $0x8] sm:$0xff]   ;;  %v1782_v21 = vmov 0.0   ;;  %v1613_v28 = vld [vmem:[%s1896_s9 + $0x10] sm:$0xff]   ;;  %vm1783_vm2 = vmmov 0  }
 0x170   : > { %v1610_v19 = vld [vmem:[%s1896_s9 + $0x40] sm:$0xff]   ;;  %1413 = vmatprep.subr.bf16.mxu0 %v1782_v21  ;;  %1433 = vmatprep.subr.bf16.mxu1 %v1782_v21  ;;  %v1612_v27 = vld [vmem:[%s1896_s9 + $0x48] sm:$0xff]   ;;  %v1614_v29 = vld [vmem:[%s1896_s9 + $0x50] sm:$0xff]   ;;  %p1345_p7 = scmp.ne.s32.totalorder %s1829_s19, 1 }
 0x171   : > { %1414 = vmatpush3.bf16.msra.mxu0 %v1609_v18  ;;  %1434 = vmatpush3.bf16.msra.mxu1 %v1610_v19  ;;  %v1615_v30 = vld [vmem:[%s1896_s9 + $0x18] sm:$0xff]   ;;  %v1617_v32 = vld [vmem:[%s1896_s9 + $0x20] sm:$0xff]   ;;  %v1619_v34 = vld [vmem:[%s1896_s9 + $0x28] sm:$0xff]  }
 0x172   : > { %1415 = vmatprep.subr.bf16.mxu0 %v1782_v21  ;;  %1435 = vmatprep.subr.bf16.mxu1 %v1782_v21  ;;  %v1616_v31 = vld [vmem:[%s1896_s9 + $0x58] sm:$0xff]   ;;  %v1618_v33 = vld [vmem:[%s1896_s9 + $0x60] sm:$0xff]   ;;  %v1620_v35 = vld [vmem:[%s1896_s9 + $0x68] sm:$0xff]  }
 0x173   : > { %v1621_v36 = vld [vmem:[%s1896_s9 + $0x30] sm:$0xff]   ;;  %1429 = vmatprep.mubr.msk.bf16.mxu0 %vm1783_vm2, %v1782_v21  ;;  %1449 = vmatprep.mubr.msk.bf16.mxu1 %vm1783_vm2, %v1782_v21  ;;  %v1623_v38 = vld [vmem:[%s1896_s9 + $0x38] sm:$0xff]   ;;  %v273_v43 = vld [vmem:[%s1907_s8 + $0x4] sm:$0x1] }
 0x174   : > { %v1622_v37 = vld [vmem:[%s1896_s9 + $0x70] sm:$0xff]   ;;  %v1624_v39 = vld [vmem:[%s1896_s9 + $0x78] sm:$0xff]   ;;  %v274_v44 = vld [vmem:[%s1907_s8 + $0x5] sm:$0x1]  ;;  %v277_v48 = vsub.f32 1.0, %v273_v43 }
 0x175   : > { %v1919_v16 = vld [vmem:[#allocation2] sm:$0x1]  ;;  %1416 = vmatpush3.bf16.msra.mxu0 %v1611_v20  ;;  %1436 = vmatpush3.bf16.msra.mxu1 %v1612_v27  ;;  %v387_v49 = vsub.f32 1.0, %v274_v44  ;;  %v252_v50 = vld [vmem:[%s1907_s8 + $0x1] sm:$0x1]  ;;  %v1626_v63 = vld [vmem:[%s1896_s9 + $0x88] sm:$0xff]  }
 0x176   : > { %v254_v17 = vsel %vm253_vm1, %v1919_v16, 0.0  ;;  %1417 = vmatprep.subr.bf16.mxu0 %v1782_v21  ;;  %1437 = vmatprep.subr.bf16.mxu1 %v1782_v21  ;;  %v251_v46 = vld [vmem:[%s1907_s8] sm:$0x1]  ;;  %v270_v51 = vld [vmem:[%s1907_s8 + $0xc] sm:$0x1]  ;;  %v1625_v60 = vld [vmem:[%s1896_s9 + $0x80] sm:$0xff]  }
 0x177   : > { %255 = vadd.xlane.f32.xlu0 %v254_v17  ;;  %v278_v54 = vmul.f32 %v277_v48, %v270_v51  ;;  %v388_v55 = vmul.f32 %v387_v49, %v270_v51  ;;  %v1627_v0 = vld [vmem:[%s1896_s9 + $0x90] sm:$0xff]   ;;  %v1628_v1 = vld [vmem:[%s1896_s9 + $0x98] sm:$0xff]   ;;  %v1629_v2 = vld [vmem:[%s1896_s9 + $0xa0] sm:$0xff]  }
 0x178   : > { %v275_v3 = vld [vmem:[%s1907_s8 + $0x6] sm:$0x1]  ;;  %v1630_v4 = vld [vmem:[%s1896_s9 + $0xa8] sm:$0xff]   ;;  %v1631_v6 = vld [vmem:[%s1896_s9 + $0xb0] sm:$0xff]  }
 0x179   : > { %1418 = vmatpush3.bf16.msra.mxu0 %v1613_v28  ;;  %1438 = vmatpush3.bf16.msra.mxu1 %v1614_v29  ;;  %v498_v5 = vsub.f32 1.0, %v275_v3  ;;  %v1632_v9 = vld [vmem:[%s1896_s9 + $0xb8] sm:$0xff]   ;;  %v1633_v12 = vld [vmem:[%s1896_s9 + $0xc0] sm:$0xff]   ;;  %v1634_v13 = vld [vmem:[%s1896_s9 + $0xc8] sm:$0xff]  }
 0x17a   : > { %1419 = vmatprep.subr.bf16.mxu0 %v1782_v21  ;;  %1439 = vmatprep.subr.bf16.mxu1 %v1782_v21  ;;  %v1635_v14 = vld [vmem:[%s1896_s9 + $0xd0] sm:$0xff]   ;;  %v1636_v15 = vld [vmem:[%s1896_s9 + $0xd8] sm:$0xff]   ;;  %v1637_v17 = vld [vmem:[%s1896_s9 + $0xe0] sm:$0xff]  }
 0x17b   : > { %v499_v8 = vmul.f32 %v498_v5, %v270_v51  ;;  %v1638_v18 = vld [vmem:[%s1896_s9 + $0xe8] sm:$0xff]   ;;  %v1639_v19 = vld [vmem:[%s1896_s9 + $0xf0] sm:$0xff]   ;;  %v1640_v20 = vld [vmem:[%s1896_s9 + $0xf8] sm:$0xff]  }
 0x17d   : > { %1420 = vmatpush3.bf16.msra.mxu0 %v1615_v30  ;;  %1440 = vmatpush3.bf16.msra.mxu1 %v1616_v31 }
 0x17e   : > { %1421 = vmatprep.subr.bf16.mxu0 %v1782_v21  ;;  %1441 = vmatprep.subr.bf16.mxu1 %v1782_v21 }
 0x181   : > { %1422 = vmatpush3.bf16.msra.mxu0 %v1617_v32  ;;  %1442 = vmatpush3.bf16.msra.mxu1 %v1618_v33 }
 0x182   : > { %1423 = vmatprep.subr.bf16.mxu0 %v1782_v21  ;;  %1443 = vmatprep.subr.bf16.mxu1 %v1782_v21 }
 0x185   : > { %1424 = vmatpush3.bf16.msra.mxu0 %v1619_v34  ;;  %1444 = vmatpush3.bf16.msra.mxu1 %v1620_v35  ;;  %v408_v35 = vld [vmem:[%s1907_s8 + $0x9] sm:$0x1] }
 0x186   : > { %1425 = vmatprep.subr.bf16.mxu0 %v1782_v21  ;;  %1445 = vmatprep.subr.bf16.mxu1 %v1782_v21 }
 0x189   : > { %1426 = vmatpush3.bf16.msra.mxu0 %v1621_v36  ;;  %1446 = vmatpush3.bf16.msra.mxu1 %v1622_v37  ;;  %v272_v36 = vld [vmem:[%s1907_s8 + $0xe] sm:$0x1] }
 0x18a   : > { %1427 = vmatprep.subr.bf16.mxu0 %v1782_v21  ;;  %1447 = vmatprep.subr.bf16.mxu1 %v1782_v21 }
 0x18d   : > { %1428 = vmatpush3.bf16.msra.mxu0 %v1623_v38  ;;  %1448 = vmatpush3.bf16.msra.mxu1 %v1624_v39 }
 0x18e   : > { %1453 = vmatprep.subr.bf16.mxu0 %v1782_v21  ;;  %1473 = vmatprep.subr.bf16.mxu1 %v1782_v21 }
 0x204   : > { %v256_v22 = vpop.xlane.xlu0 %255 }
 0x205   : > { %v258_v23 = vmul.f32 0.0078125, %v256_v22  ;;  %v297_v22 = vld [vmem:[%s1907_s8 + $0x8] sm:$0x1] }
 0x207   : > { %v259_v24 = vsub.f32 %v1919_v16, %v258_v23 }
 0x209   : > { %v260_v25 = vmul.f32 %v259_v24, %v259_v24 }
 0x20b   : > { %v261_v26 = vsel %vm253_vm1, %v260_v25, 0.0 }
 0x20c   : > { %262 = vadd.xlane.f32.xlu0 %v261_v26 }
 0x299   : > { %v263_v40 = vpop.xlane.xlu0 %262 }
 0x29a   : > { %v264_v41 = vmul.f32 0.0078125, %v263_v40 }
 0x29c   : > { %v265_v42 = vadd.f32 1e-05, %v264_v41  ;;  %v271_v41 = vld [vmem:[%s1907_s8 + $0xd] sm:$0x1] }
 0x29e   : > { %1665 = vrsqrt.f32 %v265_v42 }
 0x2a8   : > { %v1666_v45 = vpop.eup %1665 }
 0x2a9   : > { %v267_v47 = vmul.f32 %v1666_v45, %v259_v24  ;;  %v608_v24 = vld [vmem:[%s1907_s8 + $0x7] sm:$0x1] }
 0x2ab   : > { %v268_v52 = vmul.f32 %v267_v47, %v251_v46 }
 0x2ad   : > { %v269_v53 = vadd.f32 %v268_v52, %v252_v50 }
 0x2af   : > { %v276_v56 = vmul.f32 %v273_v43, %v269_v53  ;;  %v386_v57 = vmul.f32 %v274_v44, %v269_v53  ;;  %v497_v7 = vmul.f32 %v275_v3, %v269_v53  ;;  %v519_v44 = vld [vmem:[%s1907_s8 + $0xa] sm:$0x1] }
 0x2b1   : > { %v279_v58 = vadd.f32 %v278_v54, %v276_v56  ;;  %v389_v59 = vadd.f32 %v388_v55, %v386_v57  ;;  %v500_v10 = vadd.f32 %v499_v8, %v497_v7  ;;  %v1643_v7 = vld [vmem:[%s1896_s9 + $0x108] sm:$0xff]  }
 0x2b2   : > { %v1644_v8 = vld [vmem:[%s1896_s9 + $0x148] sm:$0xff]  }
 0x2b3   : > { %v296_v61 = vpack.c.bf16 %v279_v58, %v279_v58  ;;  %v407_v62 = vpack.c.bf16 %v389_v59, %v389_v59  ;;  %v518_v11 = vpack.c.bf16 %v500_v10, %v500_v10  ;;  %v731_v58 = vld [vmem:[%s1907_s8 + $0xb] sm:$0x1]  ;;  %v1646_v10 = vld [vmem:[%s1896_s9 + $0x150] sm:$0xff]  }
 0x2b5   : > { %1430 = vmatmul.mubr.bf16.vlgmr.msra.gmra.mrb[0].mxu0 %v296_v61  ;;  %1450 = vmatmul.mubr.bf16.vlgmr.msra.gmra.mrb[0].mxu1 %v407_v62 }
 0x2b6   : > { %1454 = vmatpush3.bf16.msra.mxu0 %v1625_v60  ;;  %1469 = vmatprep.mubr.msk.bf16.mxu0 %vm1783_vm2, %v1782_v21 }
 0x2b7   : > { %1455 = vmatprep.subr.bf16.mxu0 %v1782_v21  ;;  %1489 = vmatprep.mubr.msk.bf16.mxu1 %vm1783_vm2, %v1782_v21 }
 0x2b8   : > { %1474 = vmatpush3.bf16.msra.mxu1 %v1633_v12  ;;  %v1648_v12 = vld [vmem:[%s1896_s9 + $0x158] sm:$0xff]  }
 0x2b9   : > { %1475 = vmatprep.subr.bf16.mxu1 %v1782_v21 }
 0x2ba   : > { %1456 = vmatpush3.bf16.msra.mxu0 %v1626_v63 }
 0x2bb   : > { %1457 = vmatprep.subr.bf16.mxu0 %v1782_v21 }
 0x2bc   : > { %1476 = vmatpush3.bf16.msra.mxu1 %v1634_v13  ;;  %v1649_v13 = vld [vmem:[%s1896_s9 + $0x120] sm:$0xff]  }
 0x2bd   : > { %1477 = vmatprep.subr.bf16.mxu1 %v1782_v21 }
 0x2be   : > { %1458 = vmatpush3.bf16.msra.mxu0 %v1627_v0 }
 0x2bf   : > { %1459 = vmatprep.subr.bf16.mxu0 %v1782_v21 }
 0x2c0   : > { %1478 = vmatpush3.bf16.msra.mxu1 %v1635_v14  ;;  %v1650_v14 = vld [vmem:[%s1896_s9 + $0x160] sm:$0xff]  }
 0x2c1   : > { %1479 = vmatprep.subr.bf16.mxu1 %v1782_v21 }
 0x2c2   : > { %1460 = vmatpush3.bf16.msra.mxu0 %v1628_v1  ;;  %v1641_v1 = vld [vmem:[%s1896_s9 + $0x100] sm:$0xff]  }
 0x2c3   : > { %1461 = vmatprep.subr.bf16.mxu0 %v1782_v21 }
 0x2c4   : > { %1480 = vmatpush3.bf16.msra.mxu1 %v1636_v15  ;;  %v1651_v15 = vld [vmem:[%s1896_s9 + $0x128] sm:$0xff]  }
 0x2c5   : > { %1481 = vmatprep.subr.bf16.mxu1 %v1782_v21 }
 0x2c6   : > { %1462 = vmatpush3.bf16.msra.mxu0 %v1629_v2  ;;  %v1642_v2 = vld [vmem:[%s1896_s9 + $0x140] sm:$0xff]  }
 0x2c7   : > { %1463 = vmatprep.subr.bf16.mxu0 %v1782_v21 }
 0x2c8   : > { %1482 = vmatpush3.bf16.msra.mxu1 %v1637_v17  ;;  %v1652_v17 = vld [vmem:[%s1896_s9 + $0x168] sm:$0xff]  }
 0x2c9   : > { %1483 = vmatprep.subr.bf16.mxu1 %v1782_v21 }
 0x2ca   : > { %1464 = vmatpush3.bf16.msra.mxu0 %v1630_v4 }
 0x2cb   : > { %1465 = vmatprep.subr.bf16.mxu0 %v1782_v21 }
 0x2cc   : > { %1484 = vmatpush3.bf16.msra.mxu1 %v1638_v18  ;;  %v1653_v18 = vld [vmem:[%s1896_s9 + $0x130] sm:$0xff]  }
 0x2cd   : > { %1485 = vmatprep.subr.bf16.mxu1 %v1782_v21 }
 0x2ce   : > { %1466 = vmatpush3.bf16.msra.mxu0 %v1631_v6 }
 0x2cf   : > { %1467 = vmatprep.subr.bf16.mxu0 %v1782_v21 }
 0x2d0   : > { %1486 = vmatpush3.bf16.msra.mxu1 %v1639_v19  ;;  %v1654_v19 = vld [vmem:[%s1896_s9 + $0x170] sm:$0xff]  }
 0x2d1   : > { %1487 = vmatprep.subr.bf16.mxu1 %v1782_v21 }
 0x2d2   : > { %1468 = vmatpush3.bf16.msra.mxu0 %v1632_v9  ;;  %v1645_v9 = vld [vmem:[%s1896_s9 + $0x110] sm:$0xff]  }
 0x2d3   : > { %1493 = vmatprep.subr.bf16.mxu0 %v1782_v21 }
 0x2d4   : > { %1488 = vmatpush3.bf16.msra.mxu1 %v1640_v20  ;;  %v1655_v20 = vld [vmem:[%s1896_s9 + $0x138] sm:$0xff]  }
 0x2d5   : > { %1470 = vmatmul.mubr.bf16.vlgmr.msra.gmra.mrb[4].mxu0 %v518_v11  ;;  %1513 = vmatprep.subr.bf16.mxu1 %v1782_v21  ;;  %v1647_v11 = vld [vmem:[%s1896_s9 + $0x118] sm:$0xff]  }
 0x2d6   : > { %1509 = vmatprep.mubr.msk.bf16.mxu0 %vm1783_vm2, %v1782_v21  ;;  %1494 = vmatpush3.bf16.msra.mxu0 %v1641_v1 }
 0x2d7   : > { %1495 = vmatprep.subr.bf16.mxu0 %v1782_v21 }
 0x2da   : > { %1496 = vmatpush3.bf16.msra.mxu0 %v1643_v7 }
 0x2db   : > { %1497 = vmatprep.subr.bf16.mxu0 %v1782_v21 }
 0x2de   : > { %1498 = vmatpush3.bf16.msra.mxu0 %v1645_v9 }
 0x2df   : > { %1499 = vmatprep.subr.bf16.mxu0 %v1782_v21 }
 0x2e2   : > { %1500 = vmatpush3.bf16.msra.mxu0 %v1647_v11 }
 0x2e3   : > { %1501 = vmatprep.subr.bf16.mxu0 %v1782_v21 }
 0x2e6   : > { %1502 = vmatpush3.bf16.msra.mxu0 %v1649_v13 }
 0x2e7   : > { %1503 = vmatprep.subr.bf16.mxu0 %v1782_v21 }
 0x2ea   : > { %1504 = vmatpush3.bf16.msra.mxu0 %v1651_v15 }
 0x2eb   : > { %1505 = vmatprep.subr.bf16.mxu0 %v1782_v21 }
 0x2ee   : > { %1506 = vmatpush3.bf16.msra.mxu0 %v1653_v18 }
 0x2ef   : > { %1507 = vmatprep.subr.bf16.mxu0 %v1782_v21 }
 0x2f2   : > { %1508 = vmatpush3.bf16.msra.mxu0 %v1655_v20 }
 0x2f3   : > { %1533 = vmatprep.subr.bf16.mxu0 %v1782_v21 }
 0x388   : > { %v380_v23 = vpop.f32.mrb[0].mxu0  ;;  %v491_v25 = vpop.f32.mrb[0].mxu1 }
 0x389   : > { %v381_v26 = vadd.f32 %v380_v23, %v297_v22  ;;  %v1431_v27 = vpop.f32.mrb[1].mxu0  ;;  %v1451_v28 = vpop.f32.mrb[1].mxu1  ;;  %v492_v37 = vadd.f32 %v491_v25, %v408_v35  ;;  %v1656_v22 = vld [vmem:[%s1896_s9 + $0x178] sm:$0xff]  }
 0x38a   : > { %v383_v29 = vpop.f32.mrb[2].mxu0  ;;  %v494_v30 = vpop.f32.mrb[2].mxu1  ;;  %v752_v27 = vld [vmem:[%s1907_s8 + $0x10] sm:$0x1] }
 0x38b   : > { %v609_v31 = vadd.f32 %v608_v24, %v381_v26  ;;  %v1432_v32 = vpop.f32.mrb[3].mxu0  ;;  %v1452_v33 = vpop.f32.mrb[3].mxu1  ;;  %v751_v26 = vld [vmem:[%s1907_s8 + $0xf] sm:$0x1]  ;;  %v733_v29 = vld [vmem:[%s1907_s8 + $0x2] sm:$0x1] }
 0x38c   : > { %v865_v32 = vsub.f32 1.0, %v752_v27  ;;  %v734_v33 = vld [vmem:[%s1907_s8 + $0x3] sm:$0x1] }
 0x38d   : > { %v610_v34 = vmul.f32 1.442695, %v609_v31  ;;  %v754_v31 = vsub.f32 1.0, %v751_v26 }
 0x38f   : > { %1667 = vpow2.f32 %v610_v34  ;;  %v750_v34 = vld [vmem:[%s1907_s8 + $0x14] sm:$0x1] }
 0x399   : > { %v1668_v38 = vpop.eup %1667 }
 0x39a   : > { %v614_v39 = vadd.f32 %v1668_v38, %v272_v36  ;;  %v612_v40 = vmul.f32 %v1668_v38, %v492_v37  ;;  %v755_v37 = vmul.f32 %v754_v31, %v750_v34  ;;  %v866_v38 = vmul.f32 %v865_v32, %v750_v34 }
 0x39c   : > { %1669 = vrcp.f32 %v614_v39  ;;  %v613_v42 = vadd.f32 %v612_v40, %v271_v41 }
 0x3a6   : > { %v1670_v43 = vpop.eup %1669 }
 0x3a7   : > { %v616_v45 = vmul.f32 %v1670_v43, %v613_v42  ;;  %v1657_v43 = vld [vmem:[%s1896_s9 + $0x180] sm:$0xff]  }
 0x3a8   : > { %v602_v46 = vpop.f32.mrb[4].mxu0 }
 0x3a9   : > { %v603_v47 = vadd.f32 %v602_v46, %v519_v44  ;;  %v1471_v48 = vpop.f32.mrb[5].mxu0  ;;  %v1658_v46 = vld [vmem:[%s1896_s9 + $0x188] sm:$0xff]  }
 0x3aa   : > { %v605_v49 = vpop.f32.mrb[6].mxu0  ;;  %v1660_v48 = vld [vmem:[%s1896_s9 + $0x198] sm:$0xff]  }
 0x3ab   : > { %v1247_v50 = vmul.f32 -1.442695, %v603_v47  ;;  %v1472_v51 = vpop.f32.mrb[7].mxu0  ;;  %v1659_v47 = vld [vmem:[%s1896_s9 + $0x190] sm:$0xff]   ;;  %v1661_v49 = vld [vmem:[%s1896_s9 + $0x1a0] sm:$0xff]  }
 0x3ac   : > { %v1663_v51 = vld [vmem:[%s1896_s9 + $0x1b0] sm:$0xff]  }
 0x3ad   : > { %1671 = vpow2.f32 %v1247_v50  ;;  %v1662_v50 = vld [vmem:[%s1896_s9 + $0x1a8] sm:$0xff]  }
 0x3b7   : > { %v1672_v52 = vpop.eup %1671 }
 0x3b8   : > { %v620_v53 = vadd.f32 1.0, %v1672_v52  ;;  %v1664_v52 = vld [vmem:[%s1896_s9 + $0x1b8] sm:$0xff]  }
 0x3ba   : > { %1673 = vrcp.f32 %v620_v53  ;;  %v775_v53 = vld [vmem:[%s1907_s8 + $0x11] sm:$0x1] }
 0x3c4   : > { %v1674_v54 = vpop.eup %1673 }
 0x3c5   : > { %v623_v55 = vmul.f32 %v1674_v54, %v616_v45 }
 0x3c7   : > { %v641_v56 = vpack.c.bf16 %v623_v55, %v623_v55 }
 0x3c9   : > { %1490 = vmatmul.mubr.bf16.vlgmr.msra.gmra.mrb[4].mxu1 %v641_v56 }
 0x3ca   : > { %1529 = vmatprep.mubr.msk.bf16.mxu1 %vm1783_vm2, %v1782_v21  ;;  %1514 = vmatpush3.bf16.msra.mxu1 %v1642_v2 }
 0x3cb   : > { %1515 = vmatprep.subr.bf16.mxu1 %v1782_v21 }
 0x3ce   : > { %1516 = vmatpush3.bf16.msra.mxu1 %v1644_v8 }
 0x3cf   : > { %1517 = vmatprep.subr.bf16.mxu1 %v1782_v21 }
 0x3d2   : > { %1518 = vmatpush3.bf16.msra.mxu1 %v1646_v10 }
 0x3d3   : > { %1519 = vmatprep.subr.bf16.mxu1 %v1782_v21 }
 0x3d6   : > { %1520 = vmatpush3.bf16.msra.mxu1 %v1648_v12 }
 0x3d7   : > { %1521 = vmatprep.subr.bf16.mxu1 %v1782_v21 }
 0x3da   : > { %1522 = vmatpush3.bf16.msra.mxu1 %v1650_v14 }
 0x3db   : > { %1523 = vmatprep.subr.bf16.mxu1 %v1782_v21 }
 0x3de   : > { %1524 = vmatpush3.bf16.msra.mxu1 %v1652_v17 }
 0x3df   : > { %1525 = vmatprep.subr.bf16.mxu1 %v1782_v21 }
 0x3e2   : > { %1526 = vmatpush3.bf16.msra.mxu1 %v1654_v19 }
 0x3e3   : > { %1527 = vmatprep.subr.bf16.mxu1 %v1782_v21 }
 0x3e6   : > { %1528 = vmatpush3.bf16.msra.mxu1 %v1656_v22 }
 0x49c   : > { %v724_v57 = vpop.f32.mrb[4].mxu1 }
 0x49d   : > { %v730_v59 = vadd.f32 %v724_v57, %v1919_v16  ;;  %v1491_v60 = vpop.f32.mrb[5].mxu1 }
 0x49e   : > { %v727_v61 = vpop.f32.mrb[6].mxu1 }
 0x49f   : > { %v2017_v62 = vadd.f32 %v731_v58, %v730_v59  ;;  %v1492_v63 = vpop.f32.mrb[7].mxu1 }
 0x4a1   : > { %v735_v0 = vsel %vm253_vm1, %v2017_v62, 0.0 }
 0x4a2   : > { %736 = vadd.xlane.f32.xlu1 %v735_v0 }
 0x52f   : > { %v737_v16 = vpop.xlane.xlu1 %736 }
 0x530   : > { %v738_v3 = vmul.f32 0.0078125, %v737_v16  ;;  %v886_v16 = vld [vmem:[%s1907_s8 + $0x12] sm:$0x1] }
 0x532   : > { %v739_v4 = vsub.f32 %v2017_v62, %v738_v3 }
 0x534   : > { %v740_v5 = vmul.f32 %v739_v4, %v739_v4 }
 0x536   : > { %v741_v6 = vsel %vm253_vm1, %v740_v5, 0.0 }
 0x537   : > { %742 = vadd.xlane.f32.xlu1 %v741_v6  ;;  %v995_v6 = vld [vmem:[%s1907_s8 + $0x13] sm:$0x1] }
 0x5c4   : > { %v743_v23 = vpop.xlane.xlu1 %742 }
 0x5c5   : > { %v744_v24 = vmul.f32 0.0078125, %v743_v23 }
 0x5c7   : > { %v745_v25 = vadd.f32 1e-05, %v744_v24 }
 0x5c9   : > { %1675 = vrsqrt.f32 %v745_v25 }
 0x5d3   : > { %v1676_v28 = vpop.eup %1675 }
 0x5d4   : > { %v747_v30 = vmul.f32 %v1676_v28, %v739_v4  ;;  %v1098_v28 = vld [vmem:[%s2126_s1 + $0x3] sm:$0x1] (!%p1345_p7) }
 0x5d6   : > { %v748_v35 = vmul.f32 %v747_v30, %v733_v29 }
 0x5d8   : > { %v749_v36 = vadd.f32 %v748_v35, %v734_v33 }
 0x5da   : > { %v753_v39 = vmul.f32 %v751_v26, %v749_v36  ;;  %v864_v40 = vmul.f32 %v752_v27, %v749_v36 }
 0x5dc   : > { %v756_v41 = vadd.f32 %v755_v37, %v753_v39  ;;  %v867_v42 = vadd.f32 %v866_v38, %v864_v40 }
 0x5de   : > { %v774_v44 = vpack.c.bf16 %v756_v41, %v756_v41  ;;  %v885_v45 = vpack.c.bf16 %v867_v42, %v867_v42 }
 0x5e0   : > { %1510 = vmatmul.mubr.bf16.vlgmr.msra.gmra.mrb[8].mxu0 %v774_v44  ;;  %1530 = vmatmul.mubr.bf16.vlgmr.msra.gmra.mrb[8].mxu1 %v885_v45 }
 0x5e1   : > { %1534 = vmatpush3.bf16.msra.mxu0 %v1657_v43  ;;  %1549 = vmatprep.mubr.msk.bf16.mxu0 %vm1783_vm2, %v1782_v21 }
 0x5e2   : > { %1535 = vmatprep.subr.bf16.mxu0 %v1782_v21 }
 0x5e5   : > { %1536 = vmatpush3.bf16.msra.mxu0 %v1658_v46 }
 0x5e6   : > { %1537 = vmatprep.subr.bf16.mxu0 %v1782_v21 }
 0x5e9   : > { %1538 = vmatpush3.bf16.msra.mxu0 %v1659_v47 }
 0x5ea   : > { %1539 = vmatprep.subr.bf16.mxu0 %v1782_v21 }
 0x5ed   : > { %1540 = vmatpush3.bf16.msra.mxu0 %v1660_v48 }
 0x5ee   : > { %1541 = vmatprep.subr.bf16.mxu0 %v1782_v21 }
 0x5f1   : > { %1542 = vmatpush3.bf16.msra.mxu0 %v1661_v49 }
 0x5f2   : > { %1543 = vmatprep.subr.bf16.mxu0 %v1782_v21 }
 0x5f5   : > { %1544 = vmatpush3.bf16.msra.mxu0 %v1662_v50 }
 0x5f6   : > { %1545 = vmatprep.subr.bf16.mxu0 %v1782_v21 }
 0x5f9   : > { %1546 = vmatpush3.bf16.msra.mxu0 %v1663_v51 }
 0x5fa   : > { %1547 = vmatprep.subr.bf16.mxu0 %v1782_v21 }
 0x5fd   : > { %1548 = vmatpush3.bf16.msra.mxu0 %v1664_v52 }
 0x6b3   : > { %v858_v54 = vpop.f32.mrb[8].mxu0  ;;  %v969_v55 = vpop.f32.mrb[8].mxu1 }
 0x6b4   : > { %v859_v56 = vadd.f32 %v858_v54, %v775_v53  ;;  %v1511_v57 = vpop.f32.mrb[9].mxu0  ;;  %v1531_v58 = vpop.f32.mrb[9].mxu1  ;;  %v970_v21 = vadd.f32 %v969_v55, %v886_v16 }
 0x6b5   : > { %v861_v59 = vpop.f32.mrb[10].mxu0  ;;  %v972_v60 = vpop.f32.mrb[10].mxu1 }
 0x6b6   : > { %v975_v61 = vmax.f32 %v859_v56, 0.0  ;;  %v1512_v63 = vpop.f32.mrb[11].mxu0  ;;  %v1532_v0 = vpop.f32.mrb[11].mxu1  ;;  %v1344_v3 = vmul.f32 -1.442695, %v970_v21 }
 0x6b8   : > { %v976_v1 = vmul.f32 %v975_v61, %v975_v61  ;;  %1677 = vpow2.f32 %v1344_v3 }
 0x6ba   : > { %v994_v2 = vpack.c.bf16 %v976_v1, %v976_v1 }
 0x6bc   : > { %1550 = vmatmul.mubr.bf16.vlgmr.msra.gmra.mrb[12].mxu0 %v994_v2 }
 0x6c2   : > { %v1678_v4 = vpop.eup %1677 }
 0x6c3   : > { %v1087_v5 = vadd.f32 1.0, %v1678_v4 }
 0x6c5   : > { %1679 = vrcp.f32 %v1087_v5 }
 0x6cf   : > { %v1680_v10 = vpop.eup %1679 }
 0x78f   : > { %v1078_v7 = vpop.f32.mrb[12].mxu0 }
 0x790   : > { %v1079_v8 = vadd.f32 %v1078_v7, %v995_v6  ;;  %v1551_v9 = vpop.f32.mrb[13].mxu0  ;;  %1096 = sbr.rel (%p1345_p7) target bundleno = 2256 (0x8d0), region = 48 }
 0x791   : > { %v1081_v11 = vpop.f32.mrb[14].mxu0 }
 0x792   : > { %v1090_v12 = vmul.f32 %v1680_v10, %v1079_v8  ;;  %v1552_v13 = vpop.f32.mrb[15].mxu0 }
 0x794   : > { %v1091_v14 = vadd.f32 %v1090_v12, %v2017_v62  ;;  %v1097_v62 = vld [vmem:[%s2126_s1 + $0x2] sm:$0x1] (!%p1345_p7) }
 0x796   : > { %1092 = vst [vmem:[#allocation2] sm:$0x1] %v1091_v14  ;;  %v1099_v15 = vsel (!%p1345_p7), %vm253_vm1, %v1091_v14, 0.0 }
 0x797   : > { %1100 = vadd.xlane.f32.xlu0 %v1099_v15 }
 0x824   : > { %v1101_v17 = vpop.xlane.xlu0 %1100 }
 0x825   : > { %v1102_v18 = vmul.f32 0.0078125, %v1101_v17 }
 0x827   : > { %v1103_v19 = vsub.f32 %v1091_v14, %v1102_v18 }
 0x829   : > { %v1104_v20 = vmul.f32 %v1103_v19, %v1103_v19 }
 0x82b   : > { %v1105_v22 = vsel %vm253_vm1, %v1104_v20, 0.0 }
 0x82c   : > { %1106 = vadd.xlane.f32.xlu0 %v1105_v22 }
 0x8b9   : > { %v1107_v23 = vpop.xlane.xlu0 %1106 }
 0x8ba   : > { %v1108_v24 = vmul.f32 0.0078125, %v1107_v23 }
 0x8bc   : > { %v1109_v25 = vadd.f32 1e-05, %v1108_v24 }
 0x8be   : > { %1681 = vrsqrt.f32 %v1109_v25 }
 0x8c8   : > { %v1682_v26 = vpop.eup %1681 }
 0x8c9   : > { %v1111_v27 = vmul.f32 %v1682_v26, %v1103_v19 }
 0x8cb   : > { %v1112_v29 = vmul.f32 %v1111_v27, %v1097_v62 }
 0x8cd   : > { %v1113_v30 = vadd.f32 %v1112_v29, %v1098_v28 }
 0x8cf   : > { %1114 = vst [vmem:[#allocation6] sm:$0x1] %v1113_v30 }
 0x8d0 PF: > { %p1568_p4 = scmp.eq.s32.totalorder %s1829_s19, 1  ;;  %s1784_s26 = smov [#allocation6]  }
 0x8d1   : > { %s1122_s27 = sshll.u32 %s1784_s26, 4  ;;  %s1123_s27 = int_to_ptr.vmem [resolvable:$true] %s1122_s27 }
 0x8d2   : > { %s1713_s29 = scalar_lea.vmem %s1123_s27, 16  ;;  %s1719_s30 = scalar_lea.vmem %s1123_s27, 32 }
 0x8d3   : > { %p1714_p5 = scmp.ne.s32.totalorder %s1123_s27, %s1713_s29  ;;  %p1720_p12 = scmp.lt.s32.totalorder %s1123_s27, %s1123_s27 }
 0x8d4   : > { %p1721_p0 = scmp.lt.s32.totalorder %s1719_s30, %s1713_s29 }
 0x8d5   : > { %p1715_p6 = pnand %p1714_p5, %p1568_p4 }
 0x8d6   : > { %p1722_p1 = por %p1721_p0, %p1720_p12 }
 0x8d7   : > { %p1716_p10 = pneg %p1715_p6 }
 0x8d9   : > { %p1723_p2 = pnand %p1722_p1, %p1716_p10 }
 0x8db   : > { %1726 = shalt.err (!%p1723_p2)
}
 0x8dc   : > { %s1727_s28 = scalar_lea.hbm %s2129_s4, 16 }
 0x8dd   : > { %p1728_p11 = scmp.ne.s32.totalorder %s2129_s4, %s1727_s28  ;;  %p1733_p9 = scmp.lt.u32.totalorder %s1727_s28, %s2129_s4 }
 0x8df   : > { %p1729_p13 = pnand %p1728_p11, %p1568_p4 }
 0x8e1   : > { %p1730_p3 = pneg %p1729_p13 }
 0x8e3   : > { %p1735_p8 = pnand %p1733_p9, %p1730_p3 }
 0x8e5   : > { %1738 = shalt.err (!%p1735_p8)
}
 0x8e6   : > { %1560 = dma.vmem_to_hbm [thread:$0]  (%p1568_p4), %s1123_s27, 16, %s2129_s4, [#allocation5]  }
 0x8e7   : > { %1760 = dma.done.wait (%p1568_p4), [#allocation5], 16  }
 0x8e8   : > { %1762 = vsyncadd (%p1568_p4), [#allocation5], 4294967280 }
 0x8e9 PF: > { %p15_p7 = scmp.ge.s32.totalorder %s1832_s20, 4   ;;  %s2133_s15 = smov %s1769_s16 }
 0x8ea   : > { %s2134_s16 = smov %s1773_s17  ;;  %s2135_s17 = smov %s1842_s23 }
 0x8eb   : > { %s2136_s18 = smov %s1832_s20  ;;  %17 = sbr.rel (!%p15_p7) target bundleno = 4 (0x4), region = 90 }
 0x8f2   :  { %1135 = vsyncpa [#allocation4], 1 }
 0x8f3   :  { %1137 = vsyncpa [#allocation4 + $0x1], 1 }
 0x8f4   :  { %1138 = vsyncpa [#allocation5], 1 }
 0x8f5   :  { %1140 = vsyncpa [#allocation5 + $0x1], 1 }

</bundles_post_ra>
